<compile_context>
chip_gen: v6e
topology: v6e:2x2x1
jax: 0.10.0
libtpu: 0.0.40
codegen_flags: <defaults>
</compile_context>

<pallas_src>
import math
import functools

import jax
import jax.numpy as jnp
from jax.experimental import pallas as pl
from jax.experimental.pallas import tpu as pltpu


# ----------------------------------------------------------------------------
# helpers
# ----------------------------------------------------------------------------
def _round_up(x, m):
    return (x + m - 1) // m * m


_TK_CAP = 4096        # max reduction tile (bf16: 4096*256*2 = 2 MiB per B buffer)
_VMEM_LIMIT = 48 * 1024 * 1024


def _pick_tk(kp128, cap=_TK_CAP):
    """Choose reduction tile tk (multiple of 128) and padded K."""
    if kp128 <= cap:
        return kp128, kp128
    for cand in range(cap, 0, -128):
        if kp128 % cand == 0:
            return cand, kp128
    return cap, _round_up(kp128, cap)


# ----------------------------------------------------------------------------
# Pallas kernels
# ----------------------------------------------------------------------------
def _mm_kernel(a_ref, b_ref, s_ref, t_ref, o_ref, acc_ref, *, relu):
    """out = act((A @ B) * scale + bias); f32 accumulation in VMEM scratch."""
    @pl.when(pl.program_id(2) == 0)
    def _():
        acc_ref[...] = jnp.zeros_like(acc_ref)

    acc_ref[...] += jnp.dot(a_ref[...], b_ref[...],
                            preferred_element_type=jnp.float32)

    @pl.when(pl.program_id(2) == pl.num_programs(2) - 1)
    def _():
        y = acc_ref[...] * s_ref[...] + t_ref[...]
        if relu:
            y = jnp.maximum(y, 0.0)
        o_ref[...] = y.astype(o_ref.dtype)


def _mm_res_kernel(a_ref, b_ref, s_ref, t_ref, r_ref, o_ref, acc_ref, *, relu):
    """out = act((A @ B) * scale + bias + residual)."""
    @pl.when(pl.program_id(2) == 0)
    def _():
        acc_ref[...] = jnp.zeros_like(acc_ref)

    acc_ref[...] += jnp.dot(a_ref[...], b_ref[...],
                            preferred_element_type=jnp.float32)

    @pl.when(pl.program_id(2) == pl.num_programs(2) - 1)
    def _():
        y = (acc_ref[...] * s_ref[...] + t_ref[...]
             + r_ref[...].astype(jnp.float32))
        if relu:
            y = jnp.maximum(y, 0.0)
        o_ref[...] = y.astype(o_ref.dtype)


def fused_matmul(a, w_packed, scale, bias, tk, residual=None, relu=False,
                 out_dtype=jnp.bfloat16):
    """a: [M, K] (any float), w_packed: [Kp, Np] bf16 (pre-padded),
    scale/bias: [1, Np] f32.  Returns padded [Mp, Np] out_dtype (caller slices)."""
    M, K = a.shape
    Kp, Np = w_packed.shape

    tm = min(_round_up(M, 16), 1024)
    Mp = _round_up(M, tm)
    tn = 256 if Np % 256 == 0 else 128

    a_p = jnp.pad(a.astype(jnp.bfloat16), ((0, Mp - M), (0, Kp - K)))

    in_specs = [pl.BlockSpec((tm, tk), lambda i, j, k: (i, k)),
                pl.BlockSpec((tk, tn), lambda i, j, k: (k, j)),
                pl.BlockSpec((1, tn), lambda i, j, k: (0, j)),
                pl.BlockSpec((1, tn), lambda i, j, k: (0, j))]
    args = [a_p, w_packed, scale, bias]

    if residual is not None:
        r_p = jnp.pad(residual.astype(jnp.bfloat16),
                      ((0, Mp - M), (0, Np - residual.shape[1])))
        in_specs.append(pl.BlockSpec((tm, tn), lambda i, j, k: (i, j)))
        args.append(r_p)
        kernel = functools.partial(_mm_res_kernel, relu=relu)
    else:
        kernel = functools.partial(_mm_kernel, relu=relu)

    out = pl.pallas_call(
        kernel,
        out_shape=jax.ShapeDtypeStruct((Mp, Np), out_dtype),
        grid_spec=pltpu.PrefetchScalarGridSpec(
            num_scalar_prefetch=0,
            grid=(Mp // tm, Np // tn, Kp // tk),
            in_specs=in_specs,
            out_specs=pl.BlockSpec((tm, tn), lambda i, j, k: (i, j)),
            scratch_shapes=[pltpu.VMEM((tm, tn), jnp.float32)]),
        compiler_params=pltpu.CompilerParams(
            dimension_semantics=("parallel", "parallel", "arbitrary"),
            vmem_limit_bytes=_VMEM_LIMIT),
    )(*args)
    return out


def pallas_max_over_first(x3d):
    """max over leading axis.  x3d: [K, M, C] -> [M, C] (dtype-preserving)."""
    K, M, C = x3d.shape
    tm = min(_round_up(M, 16), 512)
    Mp, Cp = _round_up(M, tm), _round_up(C, 128)
    x_p = jnp.pad(x3d, ((0, 0), (0, Mp - M), (0, Cp - C)),
                  constant_values=-jnp.inf)

    def kernel(x_ref, o_ref):
        o_ref[...] = jnp.max(x_ref[...], axis=0)

    out = pl.pallas_call(
        kernel,
        out_shape=jax.ShapeDtypeStruct((Mp, Cp), x3d.dtype),
        grid=(Mp // tm,),
        in_specs=[pl.BlockSpec((K, tm, Cp), lambda i: (0, i, 0))],
        out_specs=pl.BlockSpec((tm, Cp), lambda i: (i, 0)),
        compiler_params=pltpu.CompilerParams(
            dimension_semantics=("parallel",),
            vmem_limit_bytes=_VMEM_LIMIT),
    )(x_p)
    return out[:M, :C]


# ----------------------------------------------------------------------------
# NN building blocks (im2col glue + fused Pallas conv+BN+act[+residual])
# ----------------------------------------------------------------------------
def conv_apply(x, cp, stride=1, padding=0, dilation=1, relu=False, residual=None,
               out_dtype=jnp.bfloat16):
    """x: NHWC (bf16); cp: packed conv params (weight + folded scale/bias).
    residual (optional): NHWC matching the conv output; fused into epilogue."""
    N, H, W, Cin = x.shape
    kh, kw, cout = cp["kh"], cp["kw"], cp["cout"]
    Ho = (H + 2 * padding - dilation * (kh - 1) - 1) // stride + 1
    Wo = (W + 2 * padding - dilation * (kw - 1) - 1) // stride + 1

    if kh == 1 and kw == 1 and padding == 0:
        xs = x[:, ::stride, ::stride, :] if stride != 1 else x
        a = xs.reshape(N * Ho * Wo, Cin)
    else:
        xp = jnp.pad(x, ((0, 0), (padding, padding), (padding, padding), (0, 0)))
        cols = []
        for i in range(kh):
            for j in range(kw):
                cols.append(xp[:,
                               i * dilation: i * dilation + stride * (Ho - 1) + 1: stride,
                               j * dilation: j * dilation + stride * (Wo - 1) + 1: stride,
                               :])
        a = jnp.concatenate(cols, axis=-1).reshape(N * Ho * Wo, kh * kw * Cin)

    M = N * Ho * Wo
    res2d = None if residual is None else residual.reshape(M, -1)
    out = fused_matmul(a, cp["w"], cp["scale"], cp["bias"], cp["tk"],
                       residual=res2d, relu=relu, out_dtype=out_dtype)
    return out[:M, :cout].reshape(N, Ho, Wo, cout)


def maxpool_3x3_s2_p1_ceil(x):
    """nn.MaxPool2d(kernel_size=3, stride=2, padding=1, ceil_mode=True)."""
    N, H, W, C = x.shape
    k, s, p = 3, 2, 1

    def out_dim(d):
        o = math.ceil((d + 2 * p - k) / s) + 1
        if (o - 1) * s >= d + p:   # PyTorch: drop window starting in right padding
            o -= 1
        return o

    Ho, Wo = out_dim(H), out_dim(W)
    pb_h = max(p, (k - 1) + s * (Ho - 1) + 1 - H - p)
    pb_w = max(p, (k - 1) + s * (Wo - 1) + 1 - W - p)
    xp = jnp.pad(x, ((0, 0), (p, pb_h), (p, pb_w), (0, 0)),
                 constant_values=-jnp.inf)
    wins = []
    for i in range(k):
        for j in range(k):
            wins.append(xp[:, i: i + s * (Ho - 1) + 1: s,
                              j: j + s * (Wo - 1) + 1: s, :])
    stacked = jnp.stack([w.reshape(N * Ho * Wo, C) for w in wins], axis=0)
    out = pallas_max_over_first(stacked)
    return out.reshape(N, Ho, Wo, C)


def bottleneck_fwd(x, p):
    """Standard DeepLab Bottleneck (expansion=4); residual add+ReLU fused in conv3."""
    out = conv_apply(x, p["conv1"], relu=True)
    out = conv_apply(out, p["conv2"], stride=p["stride"],
                     padding=p["dil"], dilation=p["dil"], relu=True)
    if "ds" in p:
        residual = conv_apply(x, p["ds"], stride=p["stride"], relu=False)
    else:
        residual = x
    return conv_apply(out, p["conv3"], relu=True, residual=residual)


def aspp_fwd(x, p):
    N, H, W, _ = x.shape
    f1 = conv_apply(x, p["c1"])
    f2 = conv_apply(x, p["c2"], padding=12, dilation=12)
    f3 = conv_apply(x, p["c3"], padding=24, dilation=24)
    f4 = conv_apply(x, p["c4"], padding=36, dilation=36)
    # image pooling: global avg pool (tiny reduction, JAX glue) -> 1x1 conv -> BN
    pooled = jnp.mean(x.astype(jnp.float32), axis=(1, 2), keepdims=True)
    fi = conv_apply(pooled, p["ip"])
    # bilinear upsample from 1x1 with align_corners=True == broadcast
    fi = jnp.broadcast_to(fi, (N, H, W, fi.shape[-1]))
    cat = jnp.concatenate([f1, f2, f3, f4, fi], axis=-1)
    # Dropout2d(0.1): identity in eval mode
    return conv_apply(cat, p["proj"])


def dsn_fwd(x, p):
    y = conv_apply(x, p["w1"], padding=1)                        # conv + BN
    # Dropout2d(0.1): identity in eval mode
    return conv_apply(y, p["w2"], out_dtype=jnp.float32)         # conv + bias


def resnet_forward(x_nchw, P):
    """Forward of the DeepLab ResNet; input NCHW, returns [head, dsn] in NCHW."""
    x = jnp.transpose(x_nchw, (0, 2, 3, 1)).astype(jnp.bfloat16)  # NCHW -> NHWC
    x = conv_apply(x, P["conv1"], stride=2, padding=1, relu=True)
    x = conv_apply(x, P["conv2"], stride=1, padding=1, relu=True)
    x = conv_apply(x, P["conv3"], stride=1, padding=1, relu=True)
    x = maxpool_3x3_s2_p1_ceil(x)
    for blk in P["layer1"]:
        x = bottleneck_fwd(x, blk)
    for blk in P["layer2"]:
        x = bottleneck_fwd(x, blk)
    for blk in P["layer3"]:
        x = bottleneck_fwd(x, blk)
    x_dsn = dsn_fwd(x, P["dsn"])
    for blk in P["layer4"]:
        x = bottleneck_fwd(x, blk)
    x = aspp_fwd(x, P["aspp"])
    x = conv_apply(x, P["head"], out_dtype=jnp.float32)
    return [jnp.transpose(x, (0, 3, 1, 2)), jnp.transpose(x_dsn, (0, 3, 1, 2))]


# ----------------------------------------------------------------------------
# deterministic synthetic parameters (mirrors the PyTorch __init__ shapes),
# pre-packed for the fused Pallas matmul (weight reshape/pad/bf16 + BN fold
# hoisted out of the forward path).
# ----------------------------------------------------------------------------
class _PGen:
    def __init__(self, seed=0):
        self._key = jax.random.PRNGKey(seed)

    def _next(self):
        self._key, k = jax.random.split(self._key)
        return k

    def conv(self, kh, kw, cin, cout):
        std = (2.0 / (kh * kw * cin)) ** 0.5
        return std * jax.random.normal(self._next(), (kh, kw, cin, cout), jnp.float32)

    def bn(self, c):
        return dict(
            gamma=1.0 + 0.1 * jax.random.normal(self._next(), (c,), jnp.float32),
            beta=0.05 * jax.random.normal(self._next(), (c,), jnp.float32),
            mean=0.05 * jax.random.normal(self._next(), (c,), jnp.float32),
            var=1.0 + 0.1 * jnp.abs(jax.random.normal(self._next(), (c,), jnp.float32)),
        )

    def bias(self, c):
        return 0.01 * jax.random.normal(self._next(), (c,), jnp.float32)


def _pack_conv(w_hwio, scale, bias):
    """Pre-reshape HWIO weight -> padded (Kp, Np) bf16, pad per-channel scale/bias."""
    kh, kw, cin, cout = w_hwio.shape
    K = kh * kw * cin
    kp128 = _round_up(K, 128)
    tk, Kp = _pick_tk(kp128)
    Np = _round_up(cout, 128)
    w2 = w_hwio.reshape(K, cout)                        # (i, j, cin) ordering == im2col
    wp = jnp.pad(w2, ((0, Kp - K), (0, Np - cout))).astype(jnp.bfloat16)
    sp = jnp.pad(scale.reshape(1, cout).astype(jnp.float32), ((0, 0), (0, Np - cout)))
    bp = jnp.pad(bias.reshape(1, cout).astype(jnp.float32), ((0, 0), (0, Np - cout)))
    return dict(w=wp, scale=sp, bias=bp, kh=kh, kw=kw, cout=cout, tk=tk)


def _fold_bn(bn, eps=1e-5):
    scale = bn["gamma"] / jnp.sqrt(bn["var"] + eps)
    bias = bn["beta"] - bn["mean"] * scale
    return scale, bias


def init_params(seed=0, layers=(1, 1, 1, 1), num_classes=7):
    g = _PGen(seed)

    def cbn(kh, kw, cin, cout):            # conv (no bias) + inference BN, folded
        w = g.conv(kh, kw, cin, cout)
        s, b = _fold_bn(g.bn(cout))
        return _pack_conv(w, s, b)

    def cbias(kh, kw, cin, cout):          # conv with bias, no BN
        w = g.conv(kh, kw, cin, cout)
        return _pack_conv(w, jnp.ones((cout,), jnp.float32), g.bias(cout))

    P = {}
    P["conv1"] = cbn(3, 3, 3, 64)
    P["conv2"] = cbn(3, 3, 64, 64)
    P["conv3"] = cbn(3, 3, 64, 128)

    inplanes = [128]

    def make_bottleneck(inp, planes, stride, dil_mg, has_ds):
        p = dict(conv1=cbn(1, 1, inp, planes),
                 conv2=cbn(3, 3, planes, planes),
                 conv3=cbn(1, 1, planes, planes * 4),
                 stride=stride, dil=dil_mg)
        if has_ds:
            p["ds"] = cbn(1, 1, inp, planes * 4)
        return p

    def make_layer(planes, blocks, stride=1, dilation=1, multi_grid=1):
        mg = lambda i: (multi_grid[i % len(multi_grid)]
                        if isinstance(multi_grid, tuple) else 1)
        blks = []
        has_ds = (stride != 1 or inplanes[0] != planes * 4)
        blks.append(make_bottleneck(inplanes[0], planes, stride, dilation * mg(0), has_ds))
        inplanes[0] = planes * 4
        for i in range(1, blocks):
            blks.append(make_bottleneck(inplanes[0], planes, 1, dilation * mg(i), False))
        return blks

    P["layer1"] = make_layer(64, layers[0])
    P["layer2"] = make_layer(128, layers[1], stride=2)
    P["layer3"] = make_layer(256, layers[2], stride=1, dilation=2)
    P["layer4"] = make_layer(512, layers[3], stride=1, dilation=4, multi_grid=(1, 2, 4))

    P["aspp"] = dict(
        c1=cbn(1, 1, 2048, 512),
        c2=cbn(3, 3, 2048, 512),
        c3=cbn(3, 3, 2048, 512),
        c4=cbn(3, 3, 2048, 512),
        ip=cbn(1, 1, 2048, 512),
        proj=cbn(1, 1, 512 * 5, 512))
    P["head"] = cbias(1, 1, 512, num_classes)
    P["dsn"] = dict(w1=cbn(3, 3, 1024, 512), w2=cbias(1, 1, 512, num_classes))
    return P


# ----------------------------------------------------------------------------
if __name__ == "__main__":
    NUM_CLASSES = 7
    x = jax.random.normal(jax.random.PRNGKey(0), (2, 3, 33, 33), jnp.float32)  # NCHW
    params = init_params(seed=0, layers=(1, 1, 1, 1), num_classes=NUM_CLASSES)

    out_head, out_dsn = resnet_forward(x, params)
    out_head, out_dsn = jax.block_until_ready((out_head, out_dsn))

    # 33 -> conv1(s2) 17 -> maxpool 9 -> layer2(s2) 5 ; dsn from layer3 (5x5)
    assert out_head.shape == (2, NUM_CLASSES, 5, 5), out_head.shape
    assert out_dsn.shape == (2, NUM_CLASSES, 5, 5), out_dsn.shape
    assert bool(jnp.all(jnp.isfinite(out_head))) and bool(jnp.all(jnp.isfinite(out_dsn)))
    print("KERNEL_OK")
</pallas_src>

<mosaic_0001>
module attributes {stable_mosaic.version = 11 : i64} {
  func.func @_mm_kernel(%arg0: i32, %arg1: i32, %arg2: i32, %arg3: memref<592x128xbf16, #tpu.memory_space<vmem>>, %arg4: memref<128x128xbf16, #tpu.memory_space<vmem>>, %arg5: memref<1x128xf32, #tpu.memory_space<vmem>>, %arg6: memref<1x128xf32, #tpu.memory_space<vmem>>, %arg7: memref<592x128xbf16, #tpu.memory_space<vmem>>, %arg8: memref<592x128xf32, #tpu.memory_space<vmem>>) attributes {dimension_semantics = [#tpu.dimension_semantics<parallel>, #tpu.dimension_semantics<parallel>, #tpu.dimension_semantics<arbitrary>], iteration_bounds = array<i64: 1, 1, 1>, scalar_prefetch = 0 : i64, scratch_operands = 1 : i64, tpu.core_type = #tpu.core_type<tc>, window_params = [{transform_indices = @transform_0, window_bounds = array<i64: 592, 128>}, {transform_indices = @transform_1, window_bounds = array<i64: 128, 128>}, {transform_indices = @transform_2, window_bounds = array<i64: 1, 128>}, {transform_indices = @transform_3, window_bounds = array<i64: 1, 128>}, {transform_indices = @transform_4, window_bounds = array<i64: 592, 128>}]} {
    %c0_i32 = arith.constant 0 : i32
    %0 = arith.cmpi eq, %arg2, %c0_i32 : i32
    %1 = arith.extui %0 : i1 to i32
    %c0_i32_0 = arith.constant 0 : i32
    %2 = arith.cmpi ne, %1, %c0_i32_0 : i32
    scf.if %2 {
      %cst_10 = arith.constant 0.000000e+00 : f32
      %12 = vector.broadcast %cst_10 : f32 to vector<592x128xf32>
      %c0_11 = arith.constant 0 : index
      %c0_12 = arith.constant 0 : index
      %13 = vector.load %arg8[%c0_11, %c0_12] : memref<592x128xf32, #tpu.memory_space<vmem>>, vector<592x128xf32>
      tpu.vector_store %arg8[%c0_11, %c0_12], %12 {strides = array<i32>} : memref<592x128xf32, #tpu.memory_space<vmem>>, vector<592x128xf32>,
    } else {
    }
    %c0 = arith.constant 0 : index
    %c0_1 = arith.constant 0 : index
    %3 = vector.load %arg8[%c0, %c0_1] : memref<592x128xf32, #tpu.memory_space<vmem>>, vector<592x128xf32>
    %c0_2 = arith.constant 0 : index
    %c0_3 = arith.constant 0 : index
    %4 = vector.load %arg3[%c0_2, %c0_3] : memref<592x128xbf16, #tpu.memory_space<vmem>>, vector<592x128xbf16>
    %c0_4 = arith.constant 0 : index
    %c0_5 = arith.constant 0 : index
    %5 = vector.load %arg4[%c0_4, %c0_5] : memref<128x128xbf16, #tpu.memory_space<vmem>>, vector<128x128xbf16>
    %cst = arith.constant dense<0.000000e+00> : vector<592x128xf32>
    %6 = tpu.matmul %4, %5, %cst {dimension_numbers = #tpu.dot_dimension_numbers<[1], [0], [0], [1], [0, 0, 1, 1], [], []>} : vector<592x128xbf16>, vector<128x128xbf16>, vector<592x128xf32> -> vector<592x128xf32>
    %7 = arith.addf %3, %6 : vector<592x128xf32>
    %c0_6 = arith.constant 0 : index
    %c0_7 = arith.constant 0 : index
    %8 = vector.load %arg8[%c0_6, %c0_7] : memref<592x128xf32, #tpu.memory_space<vmem>>, vector<592x128xf32>
    tpu.vector_store %arg8[%c0_6, %c0_7], %7 {strides = array<i32>} : memref<592x128xf32, #tpu.memory_space<vmem>>, vector<592x128xf32>,
    %c0_i32_8 = arith.constant 0 : i32
    %9 = arith.cmpi eq, %arg2, %c0_i32_8 : i32
    %10 = arith.extui %9 : i1 to i32
    %c0_i32_9 = arith.constant 0 : i32
    %11 = arith.cmpi ne, %10, %c0_i32_9 : i32
    scf.if %11 {
      %c0_10 = arith.constant 0 : index
      %c0_11 = arith.constant 0 : index
      %12 = vector.load %arg8[%c0_10, %c0_11] : memref<592x128xf32, #tpu.memory_space<vmem>>, vector<592x128xf32>
      %c0_12 = arith.constant 0 : index
      %c0_13 = arith.constant 0 : index
      %13 = vector.load %arg5[%c0_12, %c0_13] : memref<1x128xf32, #tpu.memory_space<vmem>>, vector<1x128xf32>
      %14 = vector.broadcast %13 : vector<1x128xf32> to vector<592x128xf32>
      %15 = arith.mulf %12, %14 : vector<592x128xf32>
      %c0_14 = arith.constant 0 : index
      %c0_15 = arith.constant 0 : index
      %16 = vector.load %arg6[%c0_14, %c0_15] : memref<1x128xf32, #tpu.memory_space<vmem>>, vector<1x128xf32>
      %17 = vector.broadcast %16 : vector<1x128xf32> to vector<592x128xf32>
      %18 = arith.addf %15, %17 : vector<592x128xf32>
      %cst_16 = arith.constant 0.000000e+00 : f32
      %19 = vector.broadcast %cst_16 : f32 to vector<592x128xf32>
      %20 = arith.maximumf %18, %19 : vector<592x128xf32>
      %21 = arith.truncf %20 : vector<592x128xf32> to vector<592x128xbf16>
      %c0_17 = arith.constant 0 : index
      %c0_18 = arith.constant 0 : index
      %22 = vector.load %arg7[%c0_17, %c0_18] : memref<592x128xbf16, #tpu.memory_space<vmem>>, vector<592x128xbf16>
      tpu.vector_store %arg7[%c0_17, %c0_18], %21 {strides = array<i32>} : memref<592x128xbf16, #tpu.memory_space<vmem>>, vector<592x128xbf16>,
    } else {
    }
    return
  }
  func.func @transform_0(%arg0: i32, %arg1: i32, %arg2: i32) -> (i32, i32) {
    %c0_i32 = arith.constant 0 : i32
    return %arg0, %arg2 : i32, i32
  }
  func.func @transform_1(%arg0: i32, %arg1: i32, %arg2: i32) -> (i32, i32) {
    %c0_i32 = arith.constant 0 : i32
    return %arg2, %arg1 : i32, i32
  }
  func.func @transform_2(%arg0: i32, %arg1: i32, %arg2: i32) -> (i32, i32) {
    %c0_i32 = arith.constant 0 : i32
    %c0_i32_0 = arith.constant 0 : i32
    return %c0_i32, %arg1 : i32, i32
  }
  func.func @transform_3(%arg0: i32, %arg1: i32, %arg2: i32) -> (i32, i32) {
    %c0_i32 = arith.constant 0 : i32
    %c0_i32_0 = arith.constant 0 : i32
    return %c0_i32, %arg1 : i32, i32
  }
  func.func @transform_4(%arg0: i32, %arg1: i32, %arg2: i32) -> (i32, i32) {
    %c0_i32 = arith.constant 0 : i32
    return %arg0, %arg1 : i32, i32
  }
}

</mosaic_0001>

<bundles_post_ra>
// kernel: tpu_custom_call.1
= control target key start
LH: loop header
LB: loop body
LE: loop exit
PB: predicated region body
PF: predicated region fallthrough
CT: control target
= control target key end

     0   :  { %9 = vsyncpa [#allocation4], 0  ;;  %s2794_s0 = inlined_call_operand.hbm [shape: bf16[592,128], index: 0, kind: input, shape index: {}]   ;;  %s2795_s1 = inlined_call_operand.hbm [shape: bf16[128,128], index: 1, kind: input, shape index: {}]   ;;  %s2796_s2 = inlined_call_operand.vmem [shape: f32[1,128], index: 2, kind: input, shape index: {}]   ;;  %s2797_s3 = inlined_call_operand.vmem [shape: f32[1,128], index: 3, kind: input, shape index: {}]   ;;  %s2798_s4 = inlined_call_operand.hbm [shape: bf16[592,128], index: 4, kind: output, shape index: {}]  }
   0x1   :  { %10 = vsyncpa [#allocation7], 0 }
   0x2   :  { %11 = vsyncpa [#allocation5], 0  ;;  %s2496_s15 = smov [#allocation3]  }
   0x3   :  { %s17_s16 = sshll.u32 %s2496_s15, 4  ;;  %s18_s16 = int_to_ptr.vmem [resolvable:$true] %s17_s16 }
   0x4   :  { %s2438_s17 = scalar_lea.vmem %s18_s16, 4736  ;;  %p2443_p1 = scmp.lt.s32.totalorder %s18_s16, %s18_s16 }
   0x5   :  { %p2439_p0 = scmp.ne.s32.totalorder %s18_s16, %s2438_s17  ;;  %p2444_p2 = scmp.lt.s32.totalorder %s2438_s17, %s2438_s17 }
   0x7   :  { %p2445_p3 = por %p2444_p2, %p2443_p1 }
   0x9   :  { %p2446_p4 = pnand %p2445_p3, %p2439_p0 }
   0xb   :  { %2449 = shalt.err (!%p2446_p4)
}
   0xc   :  { %s2497_s18 = smov 64   ;;  %s2498_s19 = smov 4  }
   0xd   :  { %23 = dma.hbm_to_vmem [thread:$0]  %s2794_s0, 4736, %s18_s16, [#allocation4], %s2497_s18, %s2497_s18, %s2498_s19  }
   0xe   :  { %s2499_s22 = smov [#allocation6]  }
   0xf   :  { %s29_s23 = sshll.u32 %s2499_s22, 4  ;;  %s30_s23 = int_to_ptr.vmem [resolvable:$true] %s29_s23 }
  0x10   :  { %s2458_s24 = scalar_lea.vmem %s30_s23, 1024  ;;  %p2463_p6 = scmp.lt.s32.totalorder %s30_s23, %s30_s23 }
  0x11   :  { %p2459_p5 = scmp.ne.s32.totalorder %s30_s23, %s2458_s24  ;;  %p2464_p7 = scmp.lt.s32.totalorder %s2458_s24, %s2458_s24 }
  0x13   :  { %p2465_p8 = por %p2464_p7, %p2463_p6 }
  0x15   :  { %p2466_p9 = pnand %p2465_p8, %p2459_p5 }
  0x17   :  { %2469 = shalt.err (!%p2466_p9)
}
  0x18   :  { %35 = dma.hbm_to_vmem [thread:$0]  %s2795_s1, 1024, %s30_s23, [#allocation7], %s2497_s18, %s2497_s18, %s2498_s19  }
  0x19   :  { %2490 = dma.done.wait [#allocation4], 4736  }
  0x1a   :  { %2491 = vsyncadd [#allocation4], 4294962560 }
  0x1b   :  { %2492 = dma.done.wait [#allocation7], 1024  }
  0x1c   :  { %2493 = vsyncadd [#allocation7], 4294966272  ;;  %v2500_v0 = vmov 0.0   ;;  %vm2501_vm0 = vmmov 0   ;;  %v2385_v1 = vld [vmem:[#allocation6 + $0x38] sm:$0xff]   ;;  %v2386_v2 = vld [vmem:[#allocation6 + $0x30] sm:$0xff]  }
  0x1d   :  { %2198 = vmatprep.subr.bf16.mxu0 %v2500_v0  ;;  %2362 = vmatprep.subr.bf16.mxu1 %v2500_v0  ;;  %v2387_v3 = vld [vmem:[#allocation6 + $0x28] sm:$0xff]   ;;  %v2388_v4 = vld [vmem:[#allocation6 + $0x20] sm:$0xff]   ;;  %v2389_v5 = vld [vmem:[#allocation6 + $0x18] sm:$0xff]  }
  0x1e   :  { %2214 = vmatprep.mubr.msk.bf16.mxu0 %vm2501_vm0, %v2500_v0  ;;  %2290 = vmatprep.mubr.msk.bf16.mxu1 %vm2501_vm0, %v2500_v0  ;;  %v2390_v6 = vld [vmem:[#allocation6 + $0x10] sm:$0xff]   ;;  %v2391_v7 = vld [vmem:[#allocation6 + $0x8] sm:$0xff]   ;;  %v2392_v8 = vld [vmem:[#allocation6] sm:$0xff]  }
  0x1f   :  { %2199 = vmatpush3.bf16.msra.mxu0 %v2385_v1  ;;  %2370 = vmatpush3.bf16.msra.mxu1 %v2385_v1  ;;  %v2393_v9 = vld [vmem:[#allocation3] sm:$0xff]   ;;  %v2394_v10 = vld [vmem:[#allocation3 + $0x98] sm:$0xff]   ;;  %v2395_v11 = vld [vmem:[#allocation3 + $0x8] sm:$0xff]  }
  0x20   :  { %2200 = vmatprep.subr.bf16.mxu0 %v2500_v0  ;;  %2363 = vmatprep.subr.bf16.mxu1 %v2500_v0  ;;  %v2396_v12 = vld [vmem:[#allocation3 + $0xa0] sm:$0xff]   ;;  %v2397_v13 = vld [vmem:[#allocation3 + $0x10] sm:$0xff]   ;;  %v2398_v14 = vld [vmem:[#allocation3 + $0xa8] sm:$0xff]  }
  0x21   :  { %v2399_v15 = vld [vmem:[#allocation3 + $0x18] sm:$0xff]   ;;  %v2400_v16 = vld [vmem:[#allocation3 + $0xb0] sm:$0xff]   ;;  %v2401_v17 = vld [vmem:[#allocation3 + $0x20] sm:$0xff]  }
  0x22   :  { %v2402_v18 = vld [vmem:[#allocation3 + $0xb8] sm:$0xff]   ;;  %v2403_v19 = vld [vmem:[#allocation3 + $0x28] sm:$0xff]   ;;  %v2404_v20 = vld [vmem:[#allocation3 + $0xc0] sm:$0xff]  }
  0x23   :  { %2201 = vmatpush3.bf16.msra.mxu0 %v2386_v2  ;;  %2371 = vmatpush3.bf16.msra.mxu1 %v2386_v2  ;;  %v2405_v21 = vld [vmem:[#allocation3 + $0x30] sm:$0xff]   ;;  %v2406_v22 = vld [vmem:[#allocation3 + $0xc8] sm:$0xff]   ;;  %v2407_v23 = vld [vmem:[#allocation3 + $0x38] sm:$0xff]  }
  0x24   :  { %2202 = vmatprep.subr.bf16.mxu0 %v2500_v0  ;;  %2364 = vmatprep.subr.bf16.mxu1 %v2500_v0  ;;  %v2408_v24 = vld [vmem:[#allocation3 + $0xd0] sm:$0xff]   ;;  %v2409_v25 = vld [vmem:[#allocation3 + $0x40] sm:$0xff]   ;;  %v2410_v26 = vld [vmem:[#allocation3 + $0xd8] sm:$0xff]  }
  0x25   :  { %v2411_v27 = vld [vmem:[#allocation3 + $0x48] sm:$0xff]   ;;  %v2412_v28 = vld [vmem:[#allocation3 + $0xe0] sm:$0xff]   ;;  %v2413_v29 = vld [vmem:[#allocation3 + $0x50] sm:$0xff]  }
  0x26   :  { %v2414_v30 = vld [vmem:[#allocation3 + $0xe8] sm:$0xff]   ;;  %v2415_v31 = vld [vmem:[#allocation3 + $0x58] sm:$0xff]   ;;  %v2416_v32 = vld [vmem:[#allocation3 + $0xf0] sm:$0xff]  }
  0x27   :  { %2203 = vmatpush3.bf16.msra.mxu0 %v2387_v3  ;;  %2372 = vmatpush3.bf16.msra.mxu1 %v2387_v3  ;;  %v2417_v33 = vld [vmem:[#allocation3 + $0x60] sm:$0xff]   ;;  %v2418_v34 = vld [vmem:[#allocation3 + $0xf8] sm:$0xff]   ;;  %v2419_v35 = vld [vmem:[#allocation3 + $0x68] sm:$0xff]  }
  0x28   :  { %2204 = vmatprep.subr.bf16.mxu0 %v2500_v0  ;;  %2365 = vmatprep.subr.bf16.mxu1 %v2500_v0  ;;  %v2420_v36 = vld [vmem:[#allocation3 + $0x100] sm:$0xff]   ;;  %v2421_v37 = vld [vmem:[#allocation3 + $0x70] sm:$0xff]   ;;  %v2422_v38 = vld [vmem:[#allocation3 + $0x108] sm:$0xff]  }
  0x29   :  { %v2423_v39 = vld [vmem:[#allocation3 + $0x78] sm:$0xff]   ;;  %v2424_v40 = vld [vmem:[#allocation3 + $0x110] sm:$0xff]   ;;  %v2425_v41 = vld [vmem:[#allocation3 + $0x80] sm:$0xff]  }
  0x2a   :  { %v2426_v42 = vld [vmem:[#allocation3 + $0x118] sm:$0xff]   ;;  %v2427_v43 = vld [vmem:[#allocation3 + $0x88] sm:$0xff]   ;;  %v2428_v44 = vld [vmem:[#allocation3 + $0x120] sm:$0xff]  }
  0x2b   :  { %2205 = vmatpush3.bf16.msra.mxu0 %v2388_v4  ;;  %2373 = vmatpush3.bf16.msra.mxu1 %v2388_v4  ;;  %v2429_v45 = vld [vmem:[#allocation3 + $0x90] sm:$0xff]   ;;  %v2633_v46 = vld [vmem:[%s2796_s2] ss:$0 sm:$0xff]  ;;  %s2502_s2 = smov [#allocation8]  }
  0x2c   :  { %2206 = vmatprep.subr.bf16.mxu0 %v2500_v0  ;;  %2366 = vmatprep.subr.bf16.mxu1 %v2500_v0  ;;  %v2639_v50 = vld [vmem:[%s2797_s3] ss:$0 sm:$0xff]  ;;  %s1724_s3 = sshll.u32 %s2502_s2, 4  ;;  %s1725_s3 = int_to_ptr.vmem [resolvable:$true] %s1724_s3 }
  0x2d   :  { %s2470_s29 = scalar_lea.vmem %s1725_s3, 4736  ;;  %p2475_p11 = scmp.lt.s32.totalorder %s1725_s3, %s1725_s3 }
  0x2e   :  { %p2471_p10 = scmp.ne.s32.totalorder %s1725_s3, %s2470_s29  ;;  %p2476_p12 = scmp.lt.s32.totalorder %s2470_s29, %s2470_s29 }
  0x2f   :  { %2207 = vmatpush3.bf16.msra.mxu0 %v2389_v5  ;;  %2374 = vmatpush3.bf16.msra.mxu1 %v2389_v5 }
  0x30   :  { %2208 = vmatprep.subr.bf16.mxu0 %v2500_v0  ;;  %2367 = vmatprep.subr.bf16.mxu1 %v2500_v0  ;;  %p2477_p13 = por %p2476_p12, %p2475_p11 }
  0x32   :  { %p2478_p0 = pnand %p2477_p13, %p2471_p10 }
  0x33   :  { %2209 = vmatpush3.bf16.msra.mxu0 %v2390_v6  ;;  %2375 = vmatpush3.bf16.msra.mxu1 %v2390_v6 }
  0x34   :  { %2210 = vmatprep.subr.bf16.mxu0 %v2500_v0  ;;  %2368 = vmatprep.subr.bf16.mxu1 %v2500_v0 }
  0x37   :  { %2211 = vmatpush3.bf16.msra.mxu0 %v2391_v7  ;;  %2376 = vmatpush3.bf16.msra.mxu1 %v2391_v7 }
  0x38   :  { %2212 = vmatprep.subr.bf16.mxu0 %v2500_v0  ;;  %2369 = vmatprep.subr.bf16.mxu1 %v2500_v0 }
  0x3b   :  { %2213 = vmatpush3.bf16.msra.mxu0 %v2392_v8  ;;  %2377 = vmatpush3.bf16.msra.mxu1 %v2392_v8 }
  0x3e   :  { %2215 = vmatmul.mubr.bf16.vlgmr.msra.gmra.mxu0 %v2393_v9  ;;  %2291 = vmatmul.mubr.bf16.vlgmr.msra.gmra.mxu1 %v2394_v10 }
  0x3f   :  { %2218 = vmatprep.mubr.msk.bf16.mxu0 %vm2501_vm0, %v2500_v0  ;;  %2294 = vmatprep.mubr.msk.bf16.mxu1 %vm2501_vm0, %v2500_v0 }
  0x46   :  { %2219 = vmatmul.mubr.bf16.gmra.mxu0 %v2395_v11  ;;  %2295 = vmatmul.mubr.bf16.gmra.mxu1 %v2396_v12 }
  0x47   :  { %2222 = vmatprep.mubr.msk.bf16.mxu0 %vm2501_vm0, %v2500_v0  ;;  %2298 = vmatprep.mubr.msk.bf16.mxu1 %vm2501_vm0, %v2500_v0 }
  0x4e   :  { %2223 = vmatmul.mubr.bf16.gmra.mxu0 %v2397_v13  ;;  %2299 = vmatmul.mubr.bf16.gmra.mxu1 %v2398_v14 }
  0x4f   :  { %2226 = vmatprep.mubr.msk.bf16.mxu0 %vm2501_vm0, %v2500_v0  ;;  %2302 = vmatprep.mubr.msk.bf16.mxu1 %vm2501_vm0, %v2500_v0 }
  0x56   :  { %2227 = vmatmul.mubr.bf16.gmra.mxu0 %v2399_v15  ;;  %2303 = vmatmul.mubr.bf16.gmra.mxu1 %v2400_v16 }
  0x57   :  { %2230 = vmatprep.mubr.msk.bf16.mxu0 %vm2501_vm0, %v2500_v0  ;;  %2306 = vmatprep.mubr.msk.bf16.mxu1 %vm2501_vm0, %v2500_v0 }
  0x5e   :  { %2231 = vmatmul.mubr.bf16.gmra.mxu0 %v2401_v17  ;;  %2307 = vmatmul.mubr.bf16.gmra.mxu1 %v2402_v18 }
  0x5f   :  { %2234 = vmatprep.mubr.msk.bf16.mxu0 %vm2501_vm0, %v2500_v0  ;;  %2310 = vmatprep.mubr.msk.bf16.mxu1 %vm2501_vm0, %v2500_v0 }
  0x66   :  { %2235 = vmatmul.mubr.bf16.gmra.mxu0 %v2403_v19  ;;  %2311 = vmatmul.mubr.bf16.gmra.mxu1 %v2404_v20 }
  0x67   :  { %2238 = vmatprep.mubr.msk.bf16.mxu0 %vm2501_vm0, %v2500_v0  ;;  %2314 = vmatprep.mubr.msk.bf16.mxu1 %vm2501_vm0, %v2500_v0 }
  0x6e   :  { %2239 = vmatmul.mubr.bf16.gmra.mxu0 %v2405_v21  ;;  %2315 = vmatmul.mubr.bf16.gmra.mxu1 %v2406_v22 }
  0x6f   :  { %2242 = vmatprep.mubr.msk.bf16.mxu0 %vm2501_vm0, %v2500_v0  ;;  %2318 = vmatprep.mubr.msk.bf16.mxu1 %vm2501_vm0, %v2500_v0 }
  0x76   :  { %2243 = vmatmul.mubr.bf16.gmra.mxu0 %v2407_v23  ;;  %2319 = vmatmul.mubr.bf16.gmra.mxu1 %v2408_v24 }
  0x77   :  { %2246 = vmatprep.mubr.msk.bf16.mxu0 %vm2501_vm0, %v2500_v0  ;;  %2322 = vmatprep.mubr.msk.bf16.mxu1 %vm2501_vm0, %v2500_v0 }
  0x7e   :  { %2247 = vmatmul.mubr.bf16.gmra.mxu0 %v2409_v25  ;;  %2323 = vmatmul.mubr.bf16.gmra.mxu1 %v2410_v26 }
  0x7f   :  { %2250 = vmatprep.mubr.msk.bf16.mxu0 %vm2501_vm0, %v2500_v0  ;;  %2326 = vmatprep.mubr.msk.bf16.mxu1 %vm2501_vm0, %v2500_v0 }
  0x86   :  { %2251 = vmatmul.mubr.bf16.gmra.mxu0 %v2411_v27  ;;  %2327 = vmatmul.mubr.bf16.gmra.mxu1 %v2412_v28 }
  0x87   :  { %2254 = vmatprep.mubr.msk.bf16.mxu0 %vm2501_vm0, %v2500_v0  ;;  %2330 = vmatprep.mubr.msk.bf16.mxu1 %vm2501_vm0, %v2500_v0 }
  0x8e   :  { %2255 = vmatmul.mubr.bf16.gmra.mxu0 %v2413_v29  ;;  %2331 = vmatmul.mubr.bf16.gmra.mxu1 %v2414_v30 }
  0x8f   :  { %2258 = vmatprep.mubr.msk.bf16.mxu0 %vm2501_vm0, %v2500_v0  ;;  %2334 = vmatprep.mubr.msk.bf16.mxu1 %vm2501_vm0, %v2500_v0 }
  0x96   :  { %2259 = vmatmul.mubr.bf16.gmra.mxu0 %v2415_v31  ;;  %2335 = vmatmul.mubr.bf16.gmra.mxu1 %v2416_v32 }
  0x97   :  { %2262 = vmatprep.mubr.msk.bf16.mxu0 %vm2501_vm0, %v2500_v0  ;;  %2338 = vmatprep.mubr.msk.bf16.mxu1 %vm2501_vm0, %v2500_v0 }
  0x9e   :  { %2263 = vmatmul.mubr.bf16.gmra.mxu0 %v2417_v33  ;;  %2339 = vmatmul.mubr.bf16.gmra.mxu1 %v2418_v34 }
  0x9f   :  { %2266 = vmatprep.mubr.msk.bf16.mxu0 %vm2501_vm0, %v2500_v0  ;;  %2342 = vmatprep.mubr.msk.bf16.mxu1 %vm2501_vm0, %v2500_v0 }
  0xa6   :  { %2267 = vmatmul.mubr.bf16.gmra.mxu0 %v2419_v35  ;;  %2343 = vmatmul.mubr.bf16.gmra.mxu1 %v2420_v36 }
  0xa7   :  { %2270 = vmatprep.mubr.msk.bf16.mxu0 %vm2501_vm0, %v2500_v0  ;;  %2346 = vmatprep.mubr.msk.bf16.mxu1 %vm2501_vm0, %v2500_v0 }
  0xae   :  { %2271 = vmatmul.mubr.bf16.gmra.mxu0 %v2421_v37  ;;  %2347 = vmatmul.mubr.bf16.gmra.mxu1 %v2422_v38 }
  0xaf   :  { %2274 = vmatprep.mubr.msk.bf16.mxu0 %vm2501_vm0, %v2500_v0  ;;  %2350 = vmatprep.mubr.msk.bf16.mxu1 %vm2501_vm0, %v2500_v0 }
  0xb6   :  { %2275 = vmatmul.mubr.bf16.gmra.mxu0 %v2423_v39  ;;  %2351 = vmatmul.mubr.bf16.gmra.mxu1 %v2424_v40 }
  0xb7   :  { %2278 = vmatprep.mubr.msk.bf16.mxu0 %vm2501_vm0, %v2500_v0  ;;  %2354 = vmatprep.mubr.msk.bf16.mxu1 %vm2501_vm0, %v2500_v0 }
  0xbe   :  { %2279 = vmatmul.mubr.bf16.gmra.mxu0 %v2425_v41  ;;  %2355 = vmatmul.mubr.bf16.gmra.mxu1 %v2426_v42 }
  0xbf   :  { %2282 = vmatprep.mubr.msk.bf16.mxu0 %vm2501_vm0, %v2500_v0  ;;  %2358 = vmatprep.mubr.msk.bf16.mxu1 %vm2501_vm0, %v2500_v0 }
  0xc6   :  { %2283 = vmatmul.mubr.bf16.gmra.mxu0 %v2427_v43  ;;  %2359 = vmatmul.mubr.bf16.gmra.mxu1 %v2428_v44 }
  0xc7   :  { %2286 = vmatprep.mubr.msk.bf16.mxu0 %vm2501_vm0, %v2500_v0 }
  0xce   :  { %2287 = vmatmul.mubr.bf16.gmra.mxu0 %v2429_v45 }
  0xfe   :  { %v593_v47 = vpop.f32.mrf.mxu0  ;;  %v745_v48 = vpop.f32.mrf.mxu1 }
  0xff   :  { %v1120_v49 = vmul.f32 %v2633_v46, %v593_v47  ;;  %v1158_v51 = vmul.f32 %v2633_v46, %v745_v48 }
 0x100   :  { %v2216_v52 = vpop.f32.mrf.mxu0  ;;  %v2292_v53 = vpop.f32.mrf.mxu1 }
 0x101   :  { %v1239_v54 = vadd.f32 %v2639_v50, %v1158_v51  ;;  %v1201_v55 = vadd.f32 %v2639_v50, %v1120_v49 }
 0x102   :  { %v596_v56 = vpop.f32.mrf.mxu0  ;;  %v748_v57 = vpop.f32.mrf.mxu1 }
 0x103   :  { %v1121_v58 = vmul.f32 %v2633_v46, %v596_v56  ;;  %v1159_v59 = vmul.f32 %v2633_v46, %v748_v57  ;;  %v1313_v62 = vmax.f32 %v1239_v54, 0.0  ;;  %v1275_v1 = vmax.f32 %v1201_v55, 0.0 }
 0x104   :  { %v2217_v60 = vpop.f32.mrf.mxu0  ;;  %v2293_v61 = vpop.f32.mrf.mxu1 }
 0x105   :  { %v1202_v63 = vadd.f32 %v2639_v50, %v1121_v58  ;;  %v1240_v0 = vadd.f32 %v2639_v50, %v1159_v59 }
 0x106   :  { %v601_v2 = vpop.f32.mrf.mxu0  ;;  %v753_v3 = vpop.f32.mrf.mxu1 }
 0x107   :  { %v1276_v4 = vmax.f32 %v1202_v63, 0.0  ;;  %v1314_v5 = vmax.f32 %v1240_v0, 0.0  ;;  %v1122_v6 = vmul.f32 %v2633_v46, %v601_v2  ;;  %v1160_v7 = vmul.f32 %v2633_v46, %v753_v3 }
 0x108   :  { %v2220_v8 = vpop.f32.mrf.mxu0  ;;  %v2296_v9 = vpop.f32.mrf.mxu1 }
 0x109   :  { %v1935_v10 = vpack.c.bf16 %v1276_v4, %v1275_v1  ;;  %v2030_v11 = vpack.c.bf16 %v1314_v5, %v1313_v62  ;;  %v1241_v12 = vadd.f32 %v2639_v50, %v1160_v7  ;;  %v1203_v13 = vadd.f32 %v2639_v50, %v1122_v6 }
 0x10a   :  { %v604_v14 = vpop.f32.mrf.mxu0  ;;  %v756_v15 = vpop.f32.mrf.mxu1 }
 0x10b   :  { %1936 = vst [vmem:[#allocation8] sm:$0xff] %v1935_v10   ;;  %2135 = vst [vmem:[#allocation8 + $0x98] sm:$0xff] %v2030_v11   ;;  %v1123_v16 = vmul.f32 %v2633_v46, %v604_v14  ;;  %v1161_v17 = vmul.f32 %v2633_v46, %v756_v15  ;;  %v1315_v20 = vmax.f32 %v1241_v12, 0.0  ;;  %v1277_v23 = vmax.f32 %v1203_v13, 0.0 }
 0x10c   :  { %v2221_v18 = vpop.f32.mrf.mxu0  ;;  %v2297_v19 = vpop.f32.mrf.mxu1 }
 0x10d   :  { %v1204_v21 = vadd.f32 %v2639_v50, %v1123_v16  ;;  %v1242_v22 = vadd.f32 %v2639_v50, %v1161_v17 }
 0x10e   :  { %v609_v24 = vpop.f32.mrf.mxu0  ;;  %v761_v25 = vpop.f32.mrf.mxu1 }
 0x10f   :  { %v1278_v26 = vmax.f32 %v1204_v21, 0.0  ;;  %v1316_v27 = vmax.f32 %v1242_v22, 0.0  ;;  %v1124_v28 = vmul.f32 %v2633_v46, %v609_v24  ;;  %v1162_v29 = vmul.f32 %v2633_v46, %v761_v25 }
 0x110   :  { %v2224_v30 = vpop.f32.mrf.mxu0  ;;  %v2300_v31 = vpop.f32.mrf.mxu1 }
 0x111   :  { %v1940_v32 = vpack.c.bf16 %v1278_v26, %v1277_v23  ;;  %v2035_v33 = vpack.c.bf16 %v1316_v27, %v1315_v20  ;;  %v1243_v34 = vadd.f32 %v2639_v50, %v1162_v29  ;;  %v1205_v35 = vadd.f32 %v2639_v50, %v1124_v28 }
 0x112   :  { %v612_v36 = vpop.f32.mrf.mxu0  ;;  %v764_v37 = vpop.f32.mrf.mxu1 }
 0x113   :  { %2117 = vst [vmem:[#allocation8 + $0x8] sm:$0xff] %v1940_v32   ;;  %2136 = vst [vmem:[#allocation8 + $0xa0] sm:$0xff] %v2035_v33   ;;  %v1125_v38 = vmul.f32 %v2633_v46, %v612_v36  ;;  %v1163_v39 = vmul.f32 %v2633_v46, %v764_v37  ;;  %v1317_v42 = vmax.f32 %v1243_v34, 0.0  ;;  %v1279_v45 = vmax.f32 %v1205_v35, 0.0 }
 0x114   :  { %v2225_v40 = vpop.f32.mrf.mxu0  ;;  %v2301_v41 = vpop.f32.mrf.mxu1 }
 0x115   :  { %v1206_v43 = vadd.f32 %v2639_v50, %v1125_v38  ;;  %v1244_v44 = vadd.f32 %v2639_v50, %v1163_v39 }
 0x116   :  { %v617_v47 = vpop.f32.mrf.mxu0  ;;  %v769_v48 = vpop.f32.mrf.mxu1 }
 0x117   :  { %v1280_v49 = vmax.f32 %v1206_v43, 0.0  ;;  %v1318_v51 = vmax.f32 %v1244_v44, 0.0  ;;  %v1126_v52 = vmul.f32 %v2633_v46, %v617_v47  ;;  %v1164_v53 = vmul.f32 %v2633_v46, %v769_v48 }
 0x118   :  { %v2228_v54 = vpop.f32.mrf.mxu0  ;;  %v2304_v55 = vpop.f32.mrf.mxu1 }
 0x119   :  { %v1945_v56 = vpack.c.bf16 %v1280_v49, %v1279_v45  ;;  %v2040_v57 = vpack.c.bf16 %v1318_v51, %v1317_v42  ;;  %v1245_v58 = vadd.f32 %v2639_v50, %v1164_v53  ;;  %v1207_v59 = vadd.f32 %v2639_v50, %v1126_v52 }
 0x11a   :  { %v620_v60 = vpop.f32.mrf.mxu0  ;;  %v772_v61 = vpop.f32.mrf.mxu1 }
 0x11b   :  { %2118 = vst [vmem:[#allocation8 + $0x10] sm:$0xff] %v1945_v56   ;;  %2137 = vst [vmem:[#allocation8 + $0xa8] sm:$0xff] %v2040_v57   ;;  %v1127_v62 = vmul.f32 %v2633_v46, %v620_v60  ;;  %v1165_v63 = vmul.f32 %v2633_v46, %v772_v61  ;;  %v1319_v2 = vmax.f32 %v1245_v58, 0.0  ;;  %v1281_v5 = vmax.f32 %v1207_v59, 0.0 }
 0x11c   :  { %v2229_v0 = vpop.f32.mrf.mxu0  ;;  %v2305_v1 = vpop.f32.mrf.mxu1 }
 0x11d   :  { %v1208_v3 = vadd.f32 %v2639_v50, %v1127_v62  ;;  %v1246_v4 = vadd.f32 %v2639_v50, %v1165_v63 }
 0x11e   :  { %v625_v6 = vpop.f32.mrf.mxu0  ;;  %v777_v7 = vpop.f32.mrf.mxu1 }
 0x11f   :  { %v1282_v8 = vmax.f32 %v1208_v3, 0.0  ;;  %v1320_v9 = vmax.f32 %v1246_v4, 0.0  ;;  %v1128_v10 = vmul.f32 %v2633_v46, %v625_v6  ;;  %v1166_v11 = vmul.f32 %v2633_v46, %v777_v7 }
 0x120   :  { %v2232_v12 = vpop.f32.mrf.mxu0  ;;  %v2308_v13 = vpop.f32.mrf.mxu1 }
 0x121   :  { %v1950_v14 = vpack.c.bf16 %v1282_v8, %v1281_v5  ;;  %v2045_v15 = vpack.c.bf16 %v1320_v9, %v1319_v2  ;;  %v1247_v16 = vadd.f32 %v2639_v50, %v1166_v11  ;;  %v1209_v17 = vadd.f32 %v2639_v50, %v1128_v10 }
 0x122   :  { %v628_v18 = vpop.f32.mrf.mxu0  ;;  %v780_v19 = vpop.f32.mrf.mxu1 }
 0x123   :  { %2119 = vst [vmem:[#allocation8 + $0x18] sm:$0xff] %v1950_v14   ;;  %2138 = vst [vmem:[#allocation8 + $0xb0] sm:$0xff] %v2045_v15   ;;  %v1129_v20 = vmul.f32 %v2633_v46, %v628_v18  ;;  %v1167_v21 = vmul.f32 %v2633_v46, %v780_v19  ;;  %v1321_v24 = vmax.f32 %v1247_v16, 0.0  ;;  %v1283_v27 = vmax.f32 %v1209_v17, 0.0 }
 0x124   :  { %v2233_v22 = vpop.f32.mrf.mxu0  ;;  %v2309_v23 = vpop.f32.mrf.mxu1 }
 0x125   :  { %v1210_v25 = vadd.f32 %v2639_v50, %v1129_v20  ;;  %v1248_v26 = vadd.f32 %v2639_v50, %v1167_v21 }
 0x126   :  { %v633_v28 = vpop.f32.mrf.mxu0  ;;  %v785_v29 = vpop.f32.mrf.mxu1 }
 0x127   :  { %v1284_v30 = vmax.f32 %v1210_v25, 0.0  ;;  %v1322_v31 = vmax.f32 %v1248_v26, 0.0  ;;  %v1130_v32 = vmul.f32 %v2633_v46, %v633_v28  ;;  %v1168_v33 = vmul.f32 %v2633_v46, %v785_v29 }
 0x128   :  { %v2236_v34 = vpop.f32.mrf.mxu0  ;;  %v2312_v35 = vpop.f32.mrf.mxu1 }
 0x129   :  { %v1955_v36 = vpack.c.bf16 %v1284_v30, %v1283_v27  ;;  %v2050_v37 = vpack.c.bf16 %v1322_v31, %v1321_v24  ;;  %v1249_v38 = vadd.f32 %v2639_v50, %v1168_v33  ;;  %v1211_v39 = vadd.f32 %v2639_v50, %v1130_v32 }
 0x12a   :  { %v636_v40 = vpop.f32.mrf.mxu0  ;;  %v788_v41 = vpop.f32.mrf.mxu1 }
 0x12b   :  { %2120 = vst [vmem:[#allocation8 + $0x20] sm:$0xff] %v1955_v36   ;;  %2139 = vst [vmem:[#allocation8 + $0xb8] sm:$0xff] %v2050_v37   ;;  %v1131_v42 = vmul.f32 %v2633_v46, %v636_v40  ;;  %v1169_v43 = vmul.f32 %v2633_v46, %v788_v41  ;;  %v1323_v47 = vmax.f32 %v1249_v38, 0.0  ;;  %v1285_v51 = vmax.f32 %v1211_v39, 0.0 }
 0x12c   :  { %v2237_v44 = vpop.f32.mrf.mxu0  ;;  %v2313_v45 = vpop.f32.mrf.mxu1 }
 0x12d   :  { %v1212_v48 = vadd.f32 %v2639_v50, %v1131_v42  ;;  %v1250_v49 = vadd.f32 %v2639_v50, %v1169_v43 }
 0x12e   :  { %v641_v52 = vpop.f32.mrf.mxu0  ;;  %v793_v53 = vpop.f32.mrf.mxu1 }
 0x12f   :  { %v1286_v54 = vmax.f32 %v1212_v48, 0.0  ;;  %v1324_v55 = vmax.f32 %v1250_v49, 0.0  ;;  %v1132_v56 = vmul.f32 %v2633_v46, %v641_v52  ;;  %v1170_v57 = vmul.f32 %v2633_v46, %v793_v53 }
 0x130   :  { %v2240_v58 = vpop.f32.mrf.mxu0  ;;  %v2316_v59 = vpop.f32.mrf.mxu1 }
 0x131   :  { %v1960_v60 = vpack.c.bf16 %v1286_v54, %v1285_v51  ;;  %v2055_v61 = vpack.c.bf16 %v1324_v55, %v1323_v47  ;;  %v1251_v62 = vadd.f32 %v2639_v50, %v1170_v57  ;;  %v1213_v63 = vadd.f32 %v2639_v50, %v1132_v56 }
 0x132   :  { %v644_v0 = vpop.f32.mrf.mxu0  ;;  %v796_v1 = vpop.f32.mrf.mxu1 }
 0x133   :  { %2121 = vst [vmem:[#allocation8 + $0x28] sm:$0xff] %v1960_v60   ;;  %2140 = vst [vmem:[#allocation8 + $0xc0] sm:$0xff] %v2055_v61   ;;  %v1133_v2 = vmul.f32 %v2633_v46, %v644_v0  ;;  %v1171_v3 = vmul.f32 %v2633_v46, %v796_v1  ;;  %v1325_v6 = vmax.f32 %v1251_v62, 0.0  ;;  %v1287_v9 = vmax.f32 %v1213_v63, 0.0 }
 0x134   :  { %v2241_v4 = vpop.f32.mrf.mxu0  ;;  %v2317_v5 = vpop.f32.mrf.mxu1 }
 0x135   :  { %v1214_v7 = vadd.f32 %v2639_v50, %v1133_v2  ;;  %v1252_v8 = vadd.f32 %v2639_v50, %v1171_v3 }
 0x136   :  { %v649_v10 = vpop.f32.mrf.mxu0  ;;  %v801_v11 = vpop.f32.mrf.mxu1 }
 0x137   :  { %v1288_v12 = vmax.f32 %v1214_v7, 0.0  ;;  %v1326_v13 = vmax.f32 %v1252_v8, 0.0  ;;  %v1134_v14 = vmul.f32 %v2633_v46, %v649_v10  ;;  %v1172_v15 = vmul.f32 %v2633_v46, %v801_v11 }
 0x138   :  { %v2244_v16 = vpop.f32.mrf.mxu0  ;;  %v2320_v17 = vpop.f32.mrf.mxu1 }
 0x139   :  { %v1965_v18 = vpack.c.bf16 %v1288_v12, %v1287_v9  ;;  %v2060_v19 = vpack.c.bf16 %v1326_v13, %v1325_v6  ;;  %v1253_v20 = vadd.f32 %v2639_v50, %v1172_v15  ;;  %v1215_v21 = vadd.f32 %v2639_v50, %v1134_v14 }
 0x13a   :  { %v652_v22 = vpop.f32.mrf.mxu0  ;;  %v804_v23 = vpop.f32.mrf.mxu1 }
 0x13b   :  { %2122 = vst [vmem:[#allocation8 + $0x30] sm:$0xff] %v1965_v18   ;;  %2141 = vst [vmem:[#allocation8 + $0xc8] sm:$0xff] %v2060_v19   ;;  %v1135_v24 = vmul.f32 %v2633_v46, %v652_v22  ;;  %v1173_v25 = vmul.f32 %v2633_v46, %v804_v23  ;;  %v1327_v28 = vmax.f32 %v1253_v20, 0.0  ;;  %v1289_v31 = vmax.f32 %v1215_v21, 0.0 }
 0x13c   :  { %v2245_v26 = vpop.f32.mrf.mxu0  ;;  %v2321_v27 = vpop.f32.mrf.mxu1 }
 0x13d   :  { %v1216_v29 = vadd.f32 %v2639_v50, %v1135_v24  ;;  %v1254_v30 = vadd.f32 %v2639_v50, %v1173_v25 }
 0x13e   :  { %v657_v32 = vpop.f32.mrf.mxu0  ;;  %v809_v33 = vpop.f32.mrf.mxu1 }
 0x13f   :  { %v1290_v34 = vmax.f32 %v1216_v29, 0.0  ;;  %v1328_v35 = vmax.f32 %v1254_v30, 0.0  ;;  %v1136_v36 = vmul.f32 %v2633_v46, %v657_v32  ;;  %v1174_v37 = vmul.f32 %v2633_v46, %v809_v33 }
 0x140   :  { %v2248_v38 = vpop.f32.mrf.mxu0  ;;  %v2324_v39 = vpop.f32.mrf.mxu1 }
 0x141   :  { %v1970_v40 = vpack.c.bf16 %v1290_v34, %v1289_v31  ;;  %v2065_v41 = vpack.c.bf16 %v1328_v35, %v1327_v28  ;;  %v1255_v42 = vadd.f32 %v2639_v50, %v1174_v37  ;;  %v1217_v43 = vadd.f32 %v2639_v50, %v1136_v36 }
 0x142   :  { %v660_v44 = vpop.f32.mrf.mxu0  ;;  %v812_v45 = vpop.f32.mrf.mxu1 }
 0x143   :  { %2123 = vst [vmem:[#allocation8 + $0x38] sm:$0xff] %v1970_v40   ;;  %2142 = vst [vmem:[#allocation8 + $0xd0] sm:$0xff] %v2065_v41   ;;  %v1137_v47 = vmul.f32 %v2633_v46, %v660_v44  ;;  %v1175_v48 = vmul.f32 %v2633_v46, %v812_v45  ;;  %v1329_v52 = vmax.f32 %v1255_v42, 0.0  ;;  %v1291_v55 = vmax.f32 %v1217_v43, 0.0 }
 0x144   :  { %v2249_v49 = vpop.f32.mrf.mxu0  ;;  %v2325_v51 = vpop.f32.mrf.mxu1 }
 0x145   :  { %v1218_v53 = vadd.f32 %v2639_v50, %v1137_v47  ;;  %v1256_v54 = vadd.f32 %v2639_v50, %v1175_v48 }
 0x146   :  { %v665_v56 = vpop.f32.mrf.mxu0  ;;  %v817_v57 = vpop.f32.mrf.mxu1 }
 0x147   :  { %v1292_v58 = vmax.f32 %v1218_v53, 0.0  ;;  %v1330_v59 = vmax.f32 %v1256_v54, 0.0  ;;  %v1138_v60 = vmul.f32 %v2633_v46, %v665_v56  ;;  %v1176_v61 = vmul.f32 %v2633_v46, %v817_v57 }
 0x148   :  { %v2252_v62 = vpop.f32.mrf.mxu0  ;;  %v2328_v63 = vpop.f32.mrf.mxu1 }
 0x149   :  { %v1975_v0 = vpack.c.bf16 %v1292_v58, %v1291_v55  ;;  %v2070_v1 = vpack.c.bf16 %v1330_v59, %v1329_v52  ;;  %v1257_v2 = vadd.f32 %v2639_v50, %v1176_v61  ;;  %v1219_v3 = vadd.f32 %v2639_v50, %v1138_v60 }
 0x14a   :  { %v668_v4 = vpop.f32.mrf.mxu0  ;;  %v820_v5 = vpop.f32.mrf.mxu1 }
 0x14b   :  { %2124 = vst [vmem:[#allocation8 + $0x40] sm:$0xff] %v1975_v0   ;;  %2143 = vst [vmem:[#allocation8 + $0xd8] sm:$0xff] %v2070_v1   ;;  %v1139_v6 = vmul.f32 %v2633_v46, %v668_v4  ;;  %v1177_v7 = vmul.f32 %v2633_v46, %v820_v5  ;;  %v1331_v10 = vmax.f32 %v1257_v2, 0.0  ;;  %v1293_v13 = vmax.f32 %v1219_v3, 0.0 }
 0x14c   :  { %v2253_v8 = vpop.f32.mrf.mxu0  ;;  %v2329_v9 = vpop.f32.mrf.mxu1 }
 0x14d   :  { %v1220_v11 = vadd.f32 %v2639_v50, %v1139_v6  ;;  %v1258_v12 = vadd.f32 %v2639_v50, %v1177_v7 }
 0x14e   :  { %v673_v14 = vpop.f32.mrf.mxu0  ;;  %v825_v15 = vpop.f32.mrf.mxu1 }
 0x14f   :  { %v1294_v16 = vmax.f32 %v1220_v11, 0.0  ;;  %v1332_v17 = vmax.f32 %v1258_v12, 0.0  ;;  %v1140_v18 = vmul.f32 %v2633_v46, %v673_v14  ;;  %v1178_v19 = vmul.f32 %v2633_v46, %v825_v15 }
 0x150   :  { %v2256_v20 = vpop.f32.mrf.mxu0  ;;  %v2332_v21 = vpop.f32.mrf.mxu1 }
 0x151   :  { %v1980_v22 = vpack.c.bf16 %v1294_v16, %v1293_v13  ;;  %v2075_v23 = vpack.c.bf16 %v1332_v17, %v1331_v10  ;;  %v1259_v24 = vadd.f32 %v2639_v50, %v1178_v19  ;;  %v1221_v25 = vadd.f32 %v2639_v50, %v1140_v18 }
 0x152   :  { %v676_v26 = vpop.f32.mrf.mxu0  ;;  %v828_v27 = vpop.f32.mrf.mxu1 }
 0x153   :  { %2125 = vst [vmem:[#allocation8 + $0x48] sm:$0xff] %v1980_v22   ;;  %2144 = vst [vmem:[#allocation8 + $0xe0] sm:$0xff] %v2075_v23   ;;  %v1141_v28 = vmul.f32 %v2633_v46, %v676_v26  ;;  %v1179_v29 = vmul.f32 %v2633_v46, %v828_v27  ;;  %v1333_v32 = vmax.f32 %v1259_v24, 0.0  ;;  %v1295_v35 = vmax.f32 %v1221_v25, 0.0 }
 0x154   :  { %v2257_v30 = vpop.f32.mrf.mxu0  ;;  %v2333_v31 = vpop.f32.mrf.mxu1 }
 0x155   :  { %v1222_v33 = vadd.f32 %v2639_v50, %v1141_v28  ;;  %v1260_v34 = vadd.f32 %v2639_v50, %v1179_v29 }
 0x156   :  { %v681_v36 = vpop.f32.mrf.mxu0  ;;  %v833_v37 = vpop.f32.mrf.mxu1 }
 0x157   :  { %v1296_v38 = vmax.f32 %v1222_v33, 0.0  ;;  %v1334_v39 = vmax.f32 %v1260_v34, 0.0  ;;  %v1142_v40 = vmul.f32 %v2633_v46, %v681_v36  ;;  %v1180_v41 = vmul.f32 %v2633_v46, %v833_v37 }
 0x158   :  { %v2260_v42 = vpop.f32.mrf.mxu0  ;;  %v2336_v43 = vpop.f32.mrf.mxu1 }
 0x159   :  { %v1985_v44 = vpack.c.bf16 %v1296_v38, %v1295_v35  ;;  %v2080_v45 = vpack.c.bf16 %v1334_v39, %v1333_v32  ;;  %v1261_v47 = vadd.f32 %v2639_v50, %v1180_v41  ;;  %v1223_v48 = vadd.f32 %v2639_v50, %v1142_v40 }
 0x15a   :  { %v684_v49 = vpop.f32.mrf.mxu0  ;;  %v836_v51 = vpop.f32.mrf.mxu1 }
 0x15b   :  { %2126 = vst [vmem:[#allocation8 + $0x50] sm:$0xff] %v1985_v44   ;;  %2145 = vst [vmem:[#allocation8 + $0xe8] sm:$0xff] %v2080_v45   ;;  %v1143_v52 = vmul.f32 %v2633_v46, %v684_v49  ;;  %v1181_v53 = vmul.f32 %v2633_v46, %v836_v51  ;;  %v1335_v56 = vmax.f32 %v1261_v47, 0.0  ;;  %v1297_v59 = vmax.f32 %v1223_v48, 0.0 }
 0x15c   :  { %v2261_v54 = vpop.f32.mrf.mxu0  ;;  %v2337_v55 = vpop.f32.mrf.mxu1 }
 0x15d   :  { %v1224_v57 = vadd.f32 %v2639_v50, %v1143_v52  ;;  %v1262_v58 = vadd.f32 %v2639_v50, %v1181_v53 }
 0x15e   :  { %v689_v60 = vpop.f32.mrf.mxu0  ;;  %v841_v61 = vpop.f32.mrf.mxu1 }
 0x15f   :  { %v1298_v62 = vmax.f32 %v1224_v57, 0.0  ;;  %v1336_v63 = vmax.f32 %v1262_v58, 0.0  ;;  %v1144_v0 = vmul.f32 %v2633_v46, %v689_v60  ;;  %v1182_v1 = vmul.f32 %v2633_v46, %v841_v61 }
 0x160   :  { %v2264_v2 = vpop.f32.mrf.mxu0  ;;  %v2340_v3 = vpop.f32.mrf.mxu1 }
 0x161   :  { %v1990_v4 = vpack.c.bf16 %v1298_v62, %v1297_v59  ;;  %v2085_v5 = vpack.c.bf16 %v1336_v63, %v1335_v56  ;;  %v1263_v6 = vadd.f32 %v2639_v50, %v1182_v1  ;;  %v1225_v7 = vadd.f32 %v2639_v50, %v1144_v0 }
 0x162   :  { %v692_v8 = vpop.f32.mrf.mxu0  ;;  %v844_v9 = vpop.f32.mrf.mxu1 }
 0x163   :  { %2127 = vst [vmem:[#allocation8 + $0x58] sm:$0xff] %v1990_v4   ;;  %2146 = vst [vmem:[#allocation8 + $0xf0] sm:$0xff] %v2085_v5   ;;  %v1145_v10 = vmul.f32 %v2633_v46, %v692_v8  ;;  %v1183_v11 = vmul.f32 %v2633_v46, %v844_v9  ;;  %v1337_v14 = vmax.f32 %v1263_v6, 0.0  ;;  %v1299_v17 = vmax.f32 %v1225_v7, 0.0 }
 0x164   :  { %v2265_v12 = vpop.f32.mrf.mxu0  ;;  %v2341_v13 = vpop.f32.mrf.mxu1 }
 0x165   :  { %v1226_v15 = vadd.f32 %v2639_v50, %v1145_v10  ;;  %v1264_v16 = vadd.f32 %v2639_v50, %v1183_v11 }
 0x166   :  { %v697_v18 = vpop.f32.mrf.mxu0  ;;  %v849_v19 = vpop.f32.mrf.mxu1 }
 0x167   :  { %v1300_v20 = vmax.f32 %v1226_v15, 0.0  ;;  %v1338_v21 = vmax.f32 %v1264_v16, 0.0  ;;  %v1146_v22 = vmul.f32 %v2633_v46, %v697_v18  ;;  %v1184_v23 = vmul.f32 %v2633_v46, %v849_v19 }
 0x168   :  { %v2268_v24 = vpop.f32.mrf.mxu0  ;;  %v2344_v25 = vpop.f32.mrf.mxu1 }
 0x169   :  { %v1995_v26 = vpack.c.bf16 %v1300_v20, %v1299_v17  ;;  %v2090_v27 = vpack.c.bf16 %v1338_v21, %v1337_v14  ;;  %v1265_v28 = vadd.f32 %v2639_v50, %v1184_v23  ;;  %v1227_v29 = vadd.f32 %v2639_v50, %v1146_v22 }
 0x16a   :  { %v700_v30 = vpop.f32.mrf.mxu0  ;;  %v852_v31 = vpop.f32.mrf.mxu1 }
 0x16b   :  { %2128 = vst [vmem:[#allocation8 + $0x60] sm:$0xff] %v1995_v26   ;;  %2147 = vst [vmem:[#allocation8 + $0xf8] sm:$0xff] %v2090_v27   ;;  %v1147_v32 = vmul.f32 %v2633_v46, %v700_v30  ;;  %v1185_v33 = vmul.f32 %v2633_v46, %v852_v31  ;;  %v1339_v36 = vmax.f32 %v1265_v28, 0.0  ;;  %v1301_v39 = vmax.f32 %v1227_v29, 0.0 }
 0x16c   :  { %v2269_v34 = vpop.f32.mrf.mxu0  ;;  %v2345_v35 = vpop.f32.mrf.mxu1 }
 0x16d   :  { %v1228_v37 = vadd.f32 %v2639_v50, %v1147_v32  ;;  %v1266_v38 = vadd.f32 %v2639_v50, %v1185_v33 }
 0x16e   :  { %v705_v40 = vpop.f32.mrf.mxu0  ;;  %v857_v41 = vpop.f32.mrf.mxu1 }
 0x16f   :  { %v1302_v42 = vmax.f32 %v1228_v37, 0.0  ;;  %v1340_v43 = vmax.f32 %v1266_v38, 0.0  ;;  %v1148_v44 = vmul.f32 %v2633_v46, %v705_v40  ;;  %v1186_v45 = vmul.f32 %v2633_v46, %v857_v41 }
 0x170   :  { %v2272_v47 = vpop.f32.mrf.mxu0  ;;  %v2348_v48 = vpop.f32.mrf.mxu1 }
 0x171   :  { %v2000_v49 = vpack.c.bf16 %v1302_v42, %v1301_v39  ;;  %v2095_v51 = vpack.c.bf16 %v1340_v43, %v1339_v36  ;;  %v1267_v52 = vadd.f32 %v2639_v50, %v1186_v45  ;;  %v1229_v53 = vadd.f32 %v2639_v50, %v1148_v44 }
 0x172   :  { %v708_v54 = vpop.f32.mrf.mxu0  ;;  %v860_v55 = vpop.f32.mrf.mxu1 }
 0x173   :  { %2129 = vst [vmem:[#allocation8 + $0x68] sm:$0xff] %v2000_v49   ;;  %2148 = vst [vmem:[#allocation8 + $0x100] sm:$0xff] %v2095_v51   ;;  %v1149_v56 = vmul.f32 %v2633_v46, %v708_v54  ;;  %v1187_v57 = vmul.f32 %v2633_v46, %v860_v55  ;;  %v1341_v60 = vmax.f32 %v1267_v52, 0.0  ;;  %v1303_v63 = vmax.f32 %v1229_v53, 0.0 }
 0x174   :  { %v2273_v58 = vpop.f32.mrf.mxu0  ;;  %v2349_v59 = vpop.f32.mrf.mxu1 }
 0x175   :  { %v1230_v61 = vadd.f32 %v2639_v50, %v1149_v56  ;;  %v1268_v62 = vadd.f32 %v2639_v50, %v1187_v57 }
 0x176   :  { %v713_v0 = vpop.f32.mrf.mxu0  ;;  %v865_v1 = vpop.f32.mrf.mxu1 }
 0x177   :  { %v1304_v2 = vmax.f32 %v1230_v61, 0.0  ;;  %v1342_v3 = vmax.f32 %v1268_v62, 0.0  ;;  %v1150_v4 = vmul.f32 %v2633_v46, %v713_v0  ;;  %v1188_v5 = vmul.f32 %v2633_v46, %v865_v1 }
 0x178   :  { %v2276_v6 = vpop.f32.mrf.mxu0  ;;  %v2352_v7 = vpop.f32.mrf.mxu1 }
 0x179   :  { %v2005_v8 = vpack.c.bf16 %v1304_v2, %v1303_v63  ;;  %v2100_v9 = vpack.c.bf16 %v1342_v3, %v1341_v60  ;;  %v1269_v10 = vadd.f32 %v2639_v50, %v1188_v5  ;;  %v1231_v11 = vadd.f32 %v2639_v50, %v1150_v4 }
 0x17a   :  { %v716_v12 = vpop.f32.mrf.mxu0  ;;  %v868_v13 = vpop.f32.mrf.mxu1 }
 0x17b   :  { %2130 = vst [vmem:[#allocation8 + $0x70] sm:$0xff] %v2005_v8   ;;  %2149 = vst [vmem:[#allocation8 + $0x108] sm:$0xff] %v2100_v9   ;;  %v1151_v14 = vmul.f32 %v2633_v46, %v716_v12  ;;  %v1189_v15 = vmul.f32 %v2633_v46, %v868_v13  ;;  %v1343_v18 = vmax.f32 %v1269_v10, 0.0  ;;  %v1305_v21 = vmax.f32 %v1231_v11, 0.0 }
 0x17c   :  { %v2277_v16 = vpop.f32.mrf.mxu0  ;;  %v2353_v17 = vpop.f32.mrf.mxu1 }
 0x17d   :  { %v1232_v19 = vadd.f32 %v2639_v50, %v1151_v14  ;;  %v1270_v20 = vadd.f32 %v2639_v50, %v1189_v15 }
 0x17e   :  { %v721_v22 = vpop.f32.mrf.mxu0  ;;  %v873_v23 = vpop.f32.mrf.mxu1 }
 0x17f   :  { %v1306_v24 = vmax.f32 %v1232_v19, 0.0  ;;  %v1344_v25 = vmax.f32 %v1270_v20, 0.0  ;;  %v1152_v26 = vmul.f32 %v2633_v46, %v721_v22  ;;  %v1190_v27 = vmul.f32 %v2633_v46, %v873_v23 }
 0x180   :  { %v2280_v28 = vpop.f32.mrf.mxu0  ;;  %v2356_v29 = vpop.f32.mrf.mxu1 }
 0x181   :  { %v2010_v30 = vpack.c.bf16 %v1306_v24, %v1305_v21  ;;  %v2105_v31 = vpack.c.bf16 %v1344_v25, %v1343_v18  ;;  %v1271_v32 = vadd.f32 %v2639_v50, %v1190_v27  ;;  %v1233_v33 = vadd.f32 %v2639_v50, %v1152_v26 }
 0x182   :  { %v724_v34 = vpop.f32.mrf.mxu0  ;;  %v876_v35 = vpop.f32.mrf.mxu1 }
 0x183   :  { %2131 = vst [vmem:[#allocation8 + $0x78] sm:$0xff] %v2010_v30   ;;  %2150 = vst [vmem:[#allocation8 + $0x110] sm:$0xff] %v2105_v31   ;;  %v1153_v36 = vmul.f32 %v2633_v46, %v724_v34  ;;  %v1191_v37 = vmul.f32 %v2633_v46, %v876_v35  ;;  %v1345_v40 = vmax.f32 %v1271_v32, 0.0  ;;  %v1307_v43 = vmax.f32 %v1233_v33, 0.0 }
 0x184   :  { %v2281_v38 = vpop.f32.mrf.mxu0  ;;  %v2357_v39 = vpop.f32.mrf.mxu1 }
 0x185   :  { %v1234_v41 = vadd.f32 %v2639_v50, %v1153_v36  ;;  %v1272_v42 = vadd.f32 %v2639_v50, %v1191_v37 }
 0x186   :  { %v729_v44 = vpop.f32.mrf.mxu0  ;;  %v881_v45 = vpop.f32.mrf.mxu1 }
 0x187   :  { %v1308_v47 = vmax.f32 %v1234_v41, 0.0  ;;  %v1346_v48 = vmax.f32 %v1272_v42, 0.0  ;;  %v1154_v49 = vmul.f32 %v2633_v46, %v729_v44  ;;  %v1192_v51 = vmul.f32 %v2633_v46, %v881_v45 }
 0x188   :  { %v2284_v52 = vpop.f32.mrf.mxu0  ;;  %v2360_v53 = vpop.f32.mrf.mxu1 }
 0x189   :  { %v2015_v54 = vpack.c.bf16 %v1308_v47, %v1307_v43  ;;  %v2110_v55 = vpack.c.bf16 %v1346_v48, %v1345_v40  ;;  %v1273_v56 = vadd.f32 %v2639_v50, %v1192_v51  ;;  %v1235_v59 = vadd.f32 %v2639_v50, %v1154_v49 }
 0x18a   :  { %v732_v57 = vpop.f32.mrf.mxu0  ;;  %v884_v58 = vpop.f32.mrf.mxu1 }
 0x18b   :  { %2132 = vst [vmem:[#allocation8 + $0x80] sm:$0xff] %v2015_v54   ;;  %2151 = vst [vmem:[#allocation8 + $0x118] sm:$0xff] %v2110_v55   ;;  %v1155_v60 = vmul.f32 %v2633_v46, %v732_v57  ;;  %v1193_v61 = vmul.f32 %v2633_v46, %v884_v58  ;;  %v1347_v0 = vmax.f32 %v1273_v56, 0.0  ;;  %v1309_v4 = vmax.f32 %v1235_v59, 0.0 }
 0x18c   :  { %v2285_v62 = vpop.f32.mrf.mxu0  ;;  %v2361_v63 = vpop.f32.mrf.mxu1 }
 0x18d   :  { %v1236_v1 = vadd.f32 %v2639_v50, %v1155_v60  ;;  %v1274_v2 = vadd.f32 %v2639_v50, %v1193_v61 }
 0x18e   :  { %v737_v3 = vpop.f32.mrf.mxu0 }
 0x18f   :  { %v1310_v5 = vmax.f32 %v1236_v1, 0.0  ;;  %v1348_v6 = vmax.f32 %v1274_v2, 0.0  ;;  %v1156_v7 = vmul.f32 %v2633_v46, %v737_v3 }
 0x190   :  { %v2288_v8 = vpop.f32.mrf.mxu0 }
 0x191   :  { %v2020_v9 = vpack.c.bf16 %v1310_v5, %v1309_v4  ;;  %v2115_v10 = vpack.c.bf16 %v1348_v6, %v1347_v0  ;;  %v1237_v12 = vadd.f32 %v2639_v50, %v1156_v7 }
 0x192   :  { %v740_v11 = vpop.f32.mrf.mxu0 }
 0x193   :  { %2133 = vst [vmem:[#allocation8 + $0x88] sm:$0xff] %v2020_v9   ;;  %2152 = vst [vmem:[#allocation8 + $0x120] sm:$0xff] %v2115_v10   ;;  %v1157_v13 = vmul.f32 %v2633_v46, %v740_v11  ;;  %v1311_v16 = vmax.f32 %v1237_v12, 0.0 }
 0x194   :  { %v2289_v14 = vpop.f32.mrf.mxu0 }
 0x195   :  { %v1238_v15 = vadd.f32 %v2639_v50, %v1157_v13 }
 0x197   :  { %v1312_v17 = vmax.f32 %v1238_v15, 0.0 }
 0x199   :  { %v2025_v18 = vpack.c.bf16 %v1312_v17, %v1311_v16 }
 0x19b   :  { %2134 = vst [vmem:[#allocation8 + $0x90] sm:$0xff] %v2025_v18  }
 0x19c   :  { %2481 = shalt.err (!%p2478_p0)
}
 0x19d   :  { %1730 = dma.vmem_to_hbm [thread:$0]  %s1725_s3, 4736, %s2798_s4, [#allocation5], %s2497_s18, %s2497_s18, %s2498_s19  }
 0x19e   :  { %2494 = dma.done.wait [#allocation5], 4736  }
 0x19f   :  { %2495 = vsyncadd [#allocation5], 4294962560 }
 0x1a0   :  { %1734 = vsyncpa [#allocation4], 1 }
 0x1a1   :  { %1735 = vsyncpa [#allocation7], 1 }
 0x1a2   :  { %1736 = vsyncpa [#allocation5], 1 }

</bundles_post_ra>
